<compile_context>
chip_gen: v6e
topology: v6e:2x2x1
jax: 0.10.0
libtpu: 0.0.40
codegen_flags: <defaults>
</compile_context>

<pallas_src>
import math

import jax
import jax.numpy as jnp
from jax.experimental import pallas as pl
from jax.experimental.pallas import tpu as pltpu

SELU_ALPHA = 1.6732632423543772848170429916717
SELU_SCALE = 1.0507009873554804934193349852946
BN_EPS = 1e-5
LANE = 128

# TODO(synk): GCN / SAGE branches require sparse adjacency message passing
# (scatter/gather over edges); only the 'MLP' branch is implemented here.


def _round_up(x, m):
    return ((x + m - 1) // m) * m


def _pad_to(a, shape):
    return jnp.pad(a, [(0, t - s) for s, t in zip(a.shape, shape)])


def _make_kernel(n_hidden, lamb, theta):
    lamb = float(lamb)
    theta = float(theta)
    exp_m2t = math.exp(-2.0 * theta)  # reused so soft_threshold needs only one exp

    def kernel(*refs):
        fea_ref, lm_ref, sw_ref, sb_ref = refs[:4]
        conv_refs = refs[4:-2]
        out_final_ref, out_pred_ref = refs[-2], refs[-1]

        # S[k] linear with S_norm (eval-mode BN) folded into its weights.
        u = jnp.dot(fea_ref[...], sw_ref[...],
                    preferred_element_type=jnp.float32) + sb_ref[...]

        # soft_threshold(u) = selu(u - theta) - selu(-u - theta)
        # exp(-u - theta) = exp(-(u - theta)) * exp(-2*theta)  -> single exp.
        a = u - theta
        b = -u - theta
        e = jnp.exp(-a)
        selu_a = SELU_SCALE * jnp.where(a > 0, a, SELU_ALPHA * (1.0 / e - 1.0))
        selu_b = SELU_SCALE * jnp.where(b > 0, b, SELU_ALPHA * (e * exp_m2t - 1.0))
        llm_emb = selu_a - selu_b

        # mix LM and LLM embeddings
        x = lm_ref[...].astype(jnp.float32) * lamb + llm_emb * (1.0 - lamb)

        # convs[:-1]: Linear (BN folded in) -> ReLU (dropout == identity)
        for i in range(n_hidden):
            w_ref, b_ref = conv_refs[2 * i], conv_refs[2 * i + 1]
            x = jnp.dot(x.astype(jnp.bfloat16), w_ref[...],
                        preferred_element_type=jnp.float32) + b_ref[...]
            x = jnp.maximum(x, 0.0)

        out_final_ref[...] = x

        # convs[-1]: final Linear -> gnn_pred
        wl_ref, bl_ref = conv_refs[-2], conv_refs[-1]
        out_pred_ref[...] = jnp.dot(x.astype(jnp.bfloat16), wl_ref[...],
                                    preferred_element_type=jnp.float32) + bl_ref[...]

    return kernel


def prepare_params(params):
    """Fold BatchNorms into adjacent Linears, pad feature dims to 128 lanes,
    and cast matmul weights to bf16 (biases stay f32). Host-side, done once."""
    K, Dllm, Dlm = params["S_w"].shape
    H = params["conv_w"][0].shape[1]
    C = params["conv_w_last"].shape[1]
    Dlm_p = _round_up(Dlm, LANE)
    H_p = _round_up(H, LANE)
    C_p = _round_up(C, LANE)

    # Fold S_norm (input-side BN over llm_dim) into each S[k] linear.
    sn_scale = params["sn_gamma"][0] * jax.lax.rsqrt(params["sn_var"][0] + BN_EPS)
    sn_shift = params["sn_beta"][0] - params["sn_mean"][0] * sn_scale
    S_w = params["S_w"] * sn_scale[None, :, None]                         # (K, Dllm, Dlm)
    S_b = params["S_b"][:, 0, :] + jnp.einsum("d,kdo->ko", sn_shift, params["S_w"])
    S_w = _pad_to(S_w, (K, Dllm, Dlm_p)).astype(jnp.bfloat16)
    S_b = _pad_to(S_b[:, None, :], (K, 1, Dlm_p)).astype(jnp.float32)

    # Fold each BatchNorm1d into the Linear that precedes it.
    conv_w, conv_b = [], []
    din_p = Dlm_p
    for i in range(len(params["conv_w"])):
        W = params["conv_w"][i]
        b = params["conv_b"][i][0]
        scale = params["bn_gamma"][i][0] * jax.lax.rsqrt(params["bn_var"][i][0] + BN_EPS)
        Wf = W * scale[None, :]
        bf = (b - params["bn_mean"][i][0]) * scale + params["bn_beta"][i][0]
        conv_w.append(_pad_to(Wf, (din_p, H_p)).astype(jnp.bfloat16))
        conv_b.append(_pad_to(bf[None, :], (1, H_p)).astype(jnp.float32))
        din_p = H_p

    W_last = _pad_to(params["conv_w_last"], (H_p, C_p)).astype(jnp.bfloat16)
    b_last = _pad_to(params["conv_b_last"], (1, C_p)).astype(jnp.float32)

    return {
        "S_w": S_w, "S_b": S_b,
        "conv_w": conv_w, "conv_b": conv_b,
        "conv_w_last": W_last, "conv_b_last": b_last,
        "theta": float(params["theta"][0, 0]),
        "dims": (Dlm, H, C, Dlm_p, H_p, C_p),
    }


def hi_model_forward(lm_emb, fea_stack, prep, *, lamb, tile_n=512):
    """Pallas implementation of HiModel.forward (MLP variant, eval mode)."""
    K, N, Dllm = fea_stack.shape
    Dlm, H, C, Dlm_p, H_p, C_p = prep["dims"]
    n_hidden = len(prep["conv_w"])

    # Row tile: sweet spot ~512 for large N; shrink (to a multiple of 8 that
    # covers N) for small inputs so we never over-pad. Keeps double-buffered
    # tiles well inside the 32 MiB default scoped VMEM (fits v7x's 64 MiB).
    tile = min(tile_n, _round_up(N, 8))
    N_p = _round_up(N, tile)
    n_tiles = N_p // tile

    fea = _pad_to(fea_stack, (K, N_p, Dllm)).astype(jnp.bfloat16)
    lm = _pad_to(lm_emb, (N_p, Dlm_p)).astype(jnp.bfloat16)

    inputs = [fea, lm, prep["S_w"], prep["S_b"]]
    in_specs = [
        pl.BlockSpec((None, tile, Dllm), lambda k, n: (k, n, 0)),   # fea[k] row tile
        pl.BlockSpec((tile, Dlm_p), lambda k, n: (n, 0)),           # lm_emb row tile
        pl.BlockSpec((None, Dllm, Dlm_p), lambda k, n: (k, 0, 0)),  # folded S[k].weight
        pl.BlockSpec((None, 1, Dlm_p), lambda k, n: (k, 0, 0)),     # folded S[k].bias
    ]
    for i in range(n_hidden):
        din_p = Dlm_p if i == 0 else H_p
        inputs += [prep["conv_w"][i], prep["conv_b"][i]]
        in_specs += [
            pl.BlockSpec((din_p, H_p), lambda k, n: (0, 0)),        # folded conv weight
            pl.BlockSpec((1, H_p), lambda k, n: (0, 0)),            # folded conv bias
        ]
    inputs += [prep["conv_w_last"], prep["conv_b_last"]]
    in_specs += [
        pl.BlockSpec((H_p, C_p), lambda k, n: (0, 0)),
        pl.BlockSpec((1, C_p), lambda k, n: (0, 0)),
    ]

    out_shape = (
        jax.ShapeDtypeStruct((K, N_p, H_p), jnp.float32),
        jax.ShapeDtypeStruct((K, N_p, C_p), jnp.float32),
    )
    out_specs = (
        pl.BlockSpec((None, tile, H_p), lambda k, n: (k, n, 0)),
        pl.BlockSpec((None, tile, C_p), lambda k, n: (k, n, 0)),
    )

    final, pred = pl.pallas_call(
        _make_kernel(n_hidden, lamb, prep["theta"]),
        grid=(K, n_tiles),
        in_specs=in_specs,
        out_specs=out_specs,
        out_shape=out_shape,
        compiler_params=pltpu.CompilerParams(
            dimension_semantics=("parallel", "parallel")),
    )(*inputs)

    # strip lane / row padding
    return final[:, :N, :H], pred[:, :N, :C]


def reference_forward(lm_emb, fea_stack, params, *, lamb):
    """Pure-JAX f32 reference mirroring HiModel.forward (MLP, eval mode)."""
    finals, preds = [], []
    K = fea_stack.shape[0]
    th = params["theta"][0, 0]
    for k in range(K):
        xk = fea_stack[k]
        xn = ((xk - params["sn_mean"]) / jnp.sqrt(params["sn_var"] + BN_EPS)
              * params["sn_gamma"] + params["sn_beta"])
        u = xn @ params["S_w"][k] + params["S_b"][k][0]
        llm = jax.nn.selu(u - th) - jax.nn.selu(-u - th)
        x = lm_emb * lamb + llm * (1.0 - lamb)
        for i in range(len(params["conv_w"])):
            x = x @ params["conv_w"][i] + params["conv_b"][i]
            x = ((x - params["bn_mean"][i]) / jnp.sqrt(params["bn_var"][i] + BN_EPS)
                 * params["bn_gamma"][i] + params["bn_beta"][i])
            x = jax.nn.relu(x)
        finals.append(x)
        preds.append(x @ params["conv_w_last"] + params["conv_b_last"])
    return jnp.stack(finals), jnp.stack(preds)


def init_params(key, *, llm_dim, lm_dim, hidden, out_channels, num_layers,
                llm_layer, thre):
    ks = jax.random.split(key, 32)
    ki = iter(range(32))

    def nrm(shape, scale=0.1):
        return scale * jax.random.normal(ks[next(ki)], shape, dtype=jnp.float32)

    params = {
        # S_norm (BatchNorm1d over llm_dim), eval-mode running stats
        "sn_gamma": 1.0 + nrm((1, llm_dim)),
        "sn_beta": nrm((1, llm_dim)),
        "sn_mean": nrm((1, llm_dim)),
        "sn_var": 1.0 + jnp.abs(nrm((1, llm_dim))),
        # S[k] linears, stored as (in, out) for x @ W
        "S_w": nrm((llm_layer, llm_dim, lm_dim)),
        "S_b": nrm((llm_layer, 1, lm_dim)),
        "theta": jnp.array([[thre]], dtype=jnp.float32),
        "conv_w": [], "conv_b": [],
        "bn_gamma": [], "bn_beta": [], "bn_mean": [], "bn_var": [],
    }
    dims = [lm_dim] + [hidden] * (num_layers - 1)
    for i in range(num_layers - 1):
        params["conv_w"].append(nrm((dims[i], hidden)))
        params["conv_b"].append(nrm((1, hidden)))
        params["bn_gamma"].append(1.0 + nrm((1, hidden)))
        params["bn_beta"].append(nrm((1, hidden)))
        params["bn_mean"].append(nrm((1, hidden)))
        params["bn_var"].append(1.0 + jnp.abs(nrm((1, hidden))))
    params["conv_w_last"] = nrm((hidden, out_channels))
    params["conv_b_last"] = nrm((1, out_channels))
    return params


if __name__ == "__main__":
    # Small, module-consistent shapes.
    N = 8            # number of nodes (batch)
    LLM_DIM = 64     # llm_dim
    LM_DIM = 32      # lm_dim
    HIDDEN = 32      # hidden_channels
    OUT = 16         # out_channels
    NUM_LAYERS = 3
    LLM_LAYER = 2    # len(fea)
    LAMB = 0.7
    THRE = 0.1

    key = jax.random.PRNGKey(0)
    k_lm, k_fea, k_par = jax.random.split(key, 3)
    lm_emb = jax.random.normal(k_lm, (N, LM_DIM), dtype=jnp.float32)
    fea_stack = jax.random.normal(k_fea, (LLM_LAYER, N, LLM_DIM), dtype=jnp.float32)
    params = init_params(k_par, llm_dim=LLM_DIM, lm_dim=LM_DIM, hidden=HIDDEN,
                         out_channels=OUT, num_layers=NUM_LAYERS,
                         llm_layer=LLM_LAYER, thre=THRE)

    prep = prepare_params(params)
    final, pred = hi_model_forward(lm_emb, fea_stack, prep, lamb=LAMB)
    final = jax.block_until_ready(final)
    pred = jax.block_until_ready(pred)

    ref_final, ref_pred = reference_forward(lm_emb, fea_stack, params, lamb=LAMB)
    # bf16 MXU matmuls + folded BN => slightly looser tolerance than pure f32.
    assert jnp.allclose(final, ref_final, atol=3e-2, rtol=3e-2), "final mismatch"
    assert jnp.allclose(pred, ref_pred, atol=3e-2, rtol=3e-2), "pred mismatch"

    print("KERNEL_OK")
</pallas_src>

<mosaic_0001>
module attributes {stable_mosaic.version = 11 : i64} {
  func.func @kernel(%arg0: i32, %arg1: i32, %arg2: memref<1x8x64xbf16, #tpu.memory_space<vmem>>, %arg3: memref<8x128xbf16, #tpu.memory_space<vmem>>, %arg4: memref<1x64x128xbf16, #tpu.memory_space<vmem>>, %arg5: memref<1x1x128xf32, #tpu.memory_space<vmem>>, %arg6: memref<128x128xbf16, #tpu.memory_space<vmem>>, %arg7: memref<1x128xf32, #tpu.memory_space<vmem>>, %arg8: memref<128x128xbf16, #tpu.memory_space<vmem>>, %arg9: memref<1x128xf32, #tpu.memory_space<vmem>>, %arg10: memref<128x128xbf16, #tpu.memory_space<vmem>>, %arg11: memref<1x128xf32, #tpu.memory_space<vmem>>, %arg12: memref<1x8x128xf32, #tpu.memory_space<vmem>>, %arg13: memref<1x8x128xf32, #tpu.memory_space<vmem>>) attributes {dimension_semantics = [#tpu.dimension_semantics<parallel>, #tpu.dimension_semantics<parallel>], iteration_bounds = array<i64: 2, 1>, scalar_prefetch = 0 : i64, scratch_operands = 0 : i64, tpu.core_type = #tpu.core_type<tc>, window_params = [{transform_indices = @transform_0, window_bounds = array<i64: 1, 8, 64>}, {transform_indices = @transform_1, window_bounds = array<i64: 8, 128>}, {transform_indices = @transform_2, window_bounds = array<i64: 1, 64, 128>}, {transform_indices = @transform_3, window_bounds = array<i64: 1, 1, 128>}, {pipeline_mode = #tpu.pipeline_mode<synchronous>, transform_indices = @transform_4, window_bounds = array<i64: 128, 128>}, {pipeline_mode = #tpu.pipeline_mode<synchronous>, transform_indices = @transform_5, window_bounds = array<i64: 1, 128>}, {pipeline_mode = #tpu.pipeline_mode<synchronous>, transform_indices = @transform_6, window_bounds = array<i64: 128, 128>}, {pipeline_mode = #tpu.pipeline_mode<synchronous>, transform_indices = @transform_7, window_bounds = array<i64: 1, 128>}, {pipeline_mode = #tpu.pipeline_mode<synchronous>, transform_indices = @transform_8, window_bounds = array<i64: 128, 128>}, {pipeline_mode = #tpu.pipeline_mode<synchronous>, transform_indices = @transform_9, window_bounds = array<i64: 1, 128>}, {transform_indices = @transform_10, window_bounds = array<i64: 1, 8, 128>}, {transform_indices = @transform_11, window_bounds = array<i64: 1, 8, 128>}]} {
    %c0 = arith.constant 0 : index
    %c0_0 = arith.constant 0 : index
    %c0_1 = arith.constant 0 : index
    %0 = vector.load %arg2[%c0, %c0_0, %c0_1] : memref<1x8x64xbf16, #tpu.memory_space<vmem>>, vector<1x8x64xbf16>
    %1 = vector.shape_cast %0 : vector<1x8x64xbf16> to vector<8x64xbf16>
    %c0_2 = arith.constant 0 : index
    %c0_3 = arith.constant 0 : index
    %c0_4 = arith.constant 0 : index
    %2 = vector.load %arg4[%c0_2, %c0_3, %c0_4] : memref<1x64x128xbf16, #tpu.memory_space<vmem>>, vector<1x64x128xbf16>
    %3 = vector.shape_cast %2 : vector<1x64x128xbf16> to vector<64x128xbf16>
    %cst = arith.constant dense<0.000000e+00> : vector<8x128xf32>
    %4 = tpu.matmul %1, %3, %cst {dimension_numbers = #tpu.dot_dimension_numbers<[1], [0], [0], [1], [0, 0, 1, 1], [], []>} : vector<8x64xbf16>, vector<64x128xbf16>, vector<8x128xf32> -> vector<8x128xf32>
    %c0_5 = arith.constant 0 : index
    %c0_6 = arith.constant 0 : index
    %c0_7 = arith.constant 0 : index
    %5 = vector.load %arg5[%c0_5, %c0_6, %c0_7] : memref<1x1x128xf32, #tpu.memory_space<vmem>>, vector<1x1x128xf32>
    %6 = vector.shape_cast %5 : vector<1x1x128xf32> to vector<1x128xf32>
    %7 = vector.broadcast %6 : vector<1x128xf32> to vector<8x128xf32>
    %8 = arith.addf %4, %7 : vector<8x128xf32>
    %cst_8 = arith.constant 1.000000e-01 : f32
    %9 = vector.broadcast %cst_8 : f32 to vector<8x128xf32>
    %10 = arith.subf %8, %9 : vector<8x128xf32>
    %cst_9 = arith.constant 0.000000e+00 : f32
    %11 = vector.broadcast %cst_9 : f32 to vector<8x128xf32>
    %12 = arith.subf %11, %8 : vector<8x128xf32>
    %cst_10 = arith.constant 1.000000e-01 : f32
    %13 = vector.broadcast %cst_10 : f32 to vector<8x128xf32>
    %14 = arith.subf %12, %13 : vector<8x128xf32>
    %cst_11 = arith.constant 0.000000e+00 : f32
    %15 = vector.broadcast %cst_11 : f32 to vector<8x128xf32>
    %16 = arith.subf %15, %10 : vector<8x128xf32>
    %17 = math.exp %16 : vector<8x128xf32>
    %cst_12 = arith.constant 0.000000e+00 : f32
    %18 = vector.broadcast %cst_12 : f32 to vector<8x128xf32>
    %19 = arith.cmpf ogt, %10, %18 : vector<8x128xf32>
    %cst_13 = arith.constant 1.000000e+00 : f32
    %20 = vector.broadcast %cst_13 : f32 to vector<8x128xf32>
    %21 = arith.divf %20, %17 : vector<8x128xf32>
    %cst_14 = arith.constant 1.000000e+00 : f32
    %22 = vector.broadcast %cst_14 : f32 to vector<8x128xf32>
    %23 = arith.subf %21, %22 : vector<8x128xf32>
    %cst_15 = arith.constant 1.67326319 : f32
    %24 = vector.broadcast %cst_15 : f32 to vector<8x128xf32>
    %25 = arith.mulf %24, %23 : vector<8x128xf32>
    %26 = arith.select %19, %10, %25 : vector<8x128xi1>, vector<8x128xf32>
    %cst_16 = arith.constant 1.05070102 : f32
    %27 = vector.broadcast %cst_16 : f32 to vector<8x128xf32>
    %28 = arith.mulf %27, %26 : vector<8x128xf32>
    %cst_17 = arith.constant 0.000000e+00 : f32
    %29 = vector.broadcast %cst_17 : f32 to vector<8x128xf32>
    %30 = arith.cmpf ogt, %14, %29 : vector<8x128xf32>
    %cst_18 = arith.constant 0.818730771 : f32
    %31 = vector.broadcast %cst_18 : f32 to vector<8x128xf32>
    %32 = arith.mulf %17, %31 : vector<8x128xf32>
    %cst_19 = arith.constant 1.000000e+00 : f32
    %33 = vector.broadcast %cst_19 : f32 to vector<8x128xf32>
    %34 = arith.subf %32, %33 : vector<8x128xf32>
    %cst_20 = arith.constant 1.67326319 : f32
    %35 = vector.broadcast %cst_20 : f32 to vector<8x128xf32>
    %36 = arith.mulf %35, %34 : vector<8x128xf32>
    %37 = arith.select %30, %14, %36 : vector<8x128xi1>, vector<8x128xf32>
    %cst_21 = arith.constant 1.05070102 : f32
    %38 = vector.broadcast %cst_21 : f32 to vector<8x128xf32>
    %39 = arith.mulf %38, %37 : vector<8x128xf32>
    %40 = arith.subf %28, %39 : vector<8x128xf32>
    %c0_22 = arith.constant 0 : index
    %c0_23 = arith.constant 0 : index
    %41 = vector.load %arg3[%c0_22, %c0_23] : memref<8x128xbf16, #tpu.memory_space<vmem>>, vector<8x128xbf16>
    %42 = arith.extf %41 : vector<8x128xbf16> to vector<8x128xf32>
    %cst_24 = arith.constant 0.699999988 : f32
    %43 = vector.broadcast %cst_24 : f32 to vector<8x128xf32>
    %44 = arith.mulf %42, %43 : vector<8x128xf32>
    %cst_25 = arith.constant 3.000000e-01 : f32
    %45 = vector.broadcast %cst_25 : f32 to vector<8x128xf32>
    %46 = arith.mulf %40, %45 : vector<8x128xf32>
    %47 = arith.addf %44, %46 : vector<8x128xf32>
    %48 = arith.truncf %47 : vector<8x128xf32> to vector<8x128xbf16>
    %c0_26 = arith.constant 0 : index
    %c0_27 = arith.constant 0 : index
    %49 = vector.load %arg6[%c0_26, %c0_27] : memref<128x128xbf16, #tpu.memory_space<vmem>>, vector<128x128xbf16>
    %cst_28 = arith.constant dense<0.000000e+00> : vector<8x128xf32>
    %50 = tpu.matmul %48, %49, %cst_28 {dimension_numbers = #tpu.dot_dimension_numbers<[1], [0], [0], [1], [0, 0, 1, 1], [], []>} : vector<8x128xbf16>, vector<128x128xbf16>, vector<8x128xf32> -> vector<8x128xf32>
    %c0_29 = arith.constant 0 : index
    %c0_30 = arith.constant 0 : index
    %51 = vector.load %arg7[%c0_29, %c0_30] : memref<1x128xf32, #tpu.memory_space<vmem>>, vector<1x128xf32>
    %52 = vector.broadcast %51 : vector<1x128xf32> to vector<8x128xf32>
    %53 = arith.addf %50, %52 : vector<8x128xf32>
    %cst_31 = arith.constant 0.000000e+00 : f32
    %54 = vector.broadcast %cst_31 : f32 to vector<8x128xf32>
    %55 = arith.maximumf %53, %54 : vector<8x128xf32>
    %56 = arith.truncf %55 : vector<8x128xf32> to vector<8x128xbf16>
    %c0_32 = arith.constant 0 : index
    %c0_33 = arith.constant 0 : index
    %57 = vector.load %arg8[%c0_32, %c0_33] : memref<128x128xbf16, #tpu.memory_space<vmem>>, vector<128x128xbf16>
    %cst_34 = arith.constant dense<0.000000e+00> : vector<8x128xf32>
    %58 = tpu.matmul %56, %57, %cst_34 {dimension_numbers = #tpu.dot_dimension_numbers<[1], [0], [0], [1], [0, 0, 1, 1], [], []>} : vector<8x128xbf16>, vector<128x128xbf16>, vector<8x128xf32> -> vector<8x128xf32>
    %c0_35 = arith.constant 0 : index
    %c0_36 = arith.constant 0 : index
    %59 = vector.load %arg9[%c0_35, %c0_36] : memref<1x128xf32, #tpu.memory_space<vmem>>, vector<1x128xf32>
    %60 = vector.broadcast %59 : vector<1x128xf32> to vector<8x128xf32>
    %61 = arith.addf %58, %60 : vector<8x128xf32>
    %cst_37 = arith.constant 0.000000e+00 : f32
    %62 = vector.broadcast %cst_37 : f32 to vector<8x128xf32>
    %63 = arith.maximumf %61, %62 : vector<8x128xf32>
    %c0_38 = arith.constant 0 : index
    %c0_39 = arith.constant 0 : index
    %c0_40 = arith.constant 0 : index
    %64 = vector.load %arg12[%c0_38, %c0_39, %c0_40] : memref<1x8x128xf32, #tpu.memory_space<vmem>>, vector<1x8x128xf32>
    %65 = vector.shape_cast %64 : vector<1x8x128xf32> to vector<8x128xf32>
    %66 = vector.shape_cast %63 : vector<8x128xf32> to vector<1x8x128xf32>
    tpu.vector_store %arg12[%c0_38, %c0_39, %c0_40], %66 {strides = array<i32>} : memref<1x8x128xf32, #tpu.memory_space<vmem>>, vector<1x8x128xf32>,
    %67 = arith.truncf %63 : vector<8x128xf32> to vector<8x128xbf16>
    %c0_41 = arith.constant 0 : index
    %c0_42 = arith.constant 0 : index
    %68 = vector.load %arg10[%c0_41, %c0_42] : memref<128x128xbf16, #tpu.memory_space<vmem>>, vector<128x128xbf16>
    %cst_43 = arith.constant dense<0.000000e+00> : vector<8x128xf32>
    %69 = tpu.matmul %67, %68, %cst_43 {dimension_numbers = #tpu.dot_dimension_numbers<[1], [0], [0], [1], [0, 0, 1, 1], [], []>} : vector<8x128xbf16>, vector<128x128xbf16>, vector<8x128xf32> -> vector<8x128xf32>
    %c0_44 = arith.constant 0 : index
    %c0_45 = arith.constant 0 : index
    %70 = vector.load %arg11[%c0_44, %c0_45] : memref<1x128xf32, #tpu.memory_space<vmem>>, vector<1x128xf32>
    %71 = vector.broadcast %70 : vector<1x128xf32> to vector<8x128xf32>
    %72 = arith.addf %69, %71 : vector<8x128xf32>
    %c0_46 = arith.constant 0 : index
    %c0_47 = arith.constant 0 : index
    %c0_48 = arith.constant 0 : index
    %73 = vector.load %arg13[%c0_46, %c0_47, %c0_48] : memref<1x8x128xf32, #tpu.memory_space<vmem>>, vector<1x8x128xf32>
    %74 = vector.shape_cast %73 : vector<1x8x128xf32> to vector<8x128xf32>
    %75 = vector.shape_cast %72 : vector<8x128xf32> to vector<1x8x128xf32>
    tpu.vector_store %arg13[%c0_46, %c0_47, %c0_48], %75 {strides = array<i32>} : memref<1x8x128xf32, #tpu.memory_space<vmem>>, vector<1x8x128xf32>,
    return
  }
  func.func @transform_0(%arg0: i32, %arg1: i32) -> (i32, i32, i32) {
    %c0_i32 = arith.constant 0 : i32
    %c0_i32_0 = arith.constant 0 : i32
    return %arg0, %arg1, %c0_i32 : i32, i32, i32
  }
  func.func @transform_1(%arg0: i32, %arg1: i32) -> (i32, i32) {
    %c0_i32 = arith.constant 0 : i32
    %c0_i32_0 = arith.constant 0 : i32
    return %arg1, %c0_i32 : i32, i32
  }
  func.func @transform_2(%arg0: i32, %arg1: i32) -> (i32, i32, i32) {
    %c0_i32 = arith.constant 0 : i32
    %c0_i32_0 = arith.constant 0 : i32
    %c0_i32_1 = arith.constant 0 : i32
    return %arg0, %c0_i32, %c0_i32_0 : i32, i32, i32
  }
  func.func @transform_3(%arg0: i32, %arg1: i32) -> (i32, i32, i32) {
    %c0_i32 = arith.constant 0 : i32
    %c0_i32_0 = arith.constant 0 : i32
    %c0_i32_1 = arith.constant 0 : i32
    return %arg0, %c0_i32, %c0_i32_0 : i32, i32, i32
  }
  func.func @transform_4(%arg0: i32, %arg1: i32) -> (i32, i32) {
    %c0_i32 = arith.constant 0 : i32
    %c0_i32_0 = arith.constant 0 : i32
    %c0_i32_1 = arith.constant 0 : i32
    return %c0_i32, %c0_i32_0 : i32, i32
  }
  func.func @transform_5(%arg0: i32, %arg1: i32) -> (i32, i32) {
    %c0_i32 = arith.constant 0 : i32
    %c0_i32_0 = arith.constant 0 : i32
    %c0_i32_1 = arith.constant 0 : i32
    return %c0_i32, %c0_i32_0 : i32, i32
  }
  func.func @transform_6(%arg0: i32, %arg1: i32) -> (i32, i32) {
    %c0_i32 = arith.constant 0 : i32
    %c0_i32_0 = arith.constant 0 : i32
    %c0_i32_1 = arith.constant 0 : i32
    return %c0_i32, %c0_i32_0 : i32, i32
  }
  func.func @transform_7(%arg0: i32, %arg1: i32) -> (i32, i32) {
    %c0_i32 = arith.constant 0 : i32
    %c0_i32_0 = arith.constant 0 : i32
    %c0_i32_1 = arith.constant 0 : i32
    return %c0_i32, %c0_i32_0 : i32, i32
  }
  func.func @transform_8(%arg0: i32, %arg1: i32) -> (i32, i32) {
    %c0_i32 = arith.constant 0 : i32
    %c0_i32_0 = arith.constant 0 : i32
    %c0_i32_1 = arith.constant 0 : i32
    return %c0_i32, %c0_i32_0 : i32, i32
  }
  func.func @transform_9(%arg0: i32, %arg1: i32) -> (i32, i32) {
    %c0_i32 = arith.constant 0 : i32
    %c0_i32_0 = arith.constant 0 : i32
    %c0_i32_1 = arith.constant 0 : i32
    return %c0_i32, %c0_i32_0 : i32, i32
  }
  func.func @transform_10(%arg0: i32, %arg1: i32) -> (i32, i32, i32) {
    %c0_i32 = arith.constant 0 : i32
    %c0_i32_0 = arith.constant 0 : i32
    return %arg0, %arg1, %c0_i32 : i32, i32, i32
  }
  func.func @transform_11(%arg0: i32, %arg1: i32) -> (i32, i32, i32) {
    %c0_i32 = arith.constant 0 : i32
    %c0_i32_0 = arith.constant 0 : i32
    return %arg0, %arg1, %c0_i32 : i32, i32, i32
  }
}

</mosaic_0001>

<bundles_post_ra>
// kernel: tpu_custom_call.1
= control target key start
LH: loop header
LB: loop body
LE: loop exit
PB: predicated region body
PF: predicated region fallthrough
CT: control target
= control target key end

     0   :  { %s2219_s0 = inlined_call_operand.hbm [shape: bf16[2,8,64], index: 0, kind: input, shape index: {}]   ;;  %s2220_s1 = inlined_call_operand.hbm [shape: bf16[8,128], index: 1, kind: input, shape index: {}]   ;;  %s2221_s2 = inlined_call_operand.hbm [shape: bf16[2,64,128], index: 2, kind: input, shape index: {}]   ;;  %s2222_s3 = inlined_call_operand.vmem [shape: f32[2,1,128], index: 3, kind: input, shape index: {}]   ;;  %s2223_s4 = inlined_call_operand.hbm [shape: bf16[128,128], index: 4, kind: input, shape index: {}]   ;;  %s2224_s5 = inlined_call_operand.vmem [shape: f32[1,128], index: 5, kind: input, shape index: {}]   ;;  %s2225_s6 = inlined_call_operand.hbm [shape: bf16[128,128], index: 6, kind: input, shape index: {}]   ;;  %s2226_s7 = inlined_call_operand.vmem [shape: f32[1,128], index: 7, kind: input, shape index: {}]   ;;  %s2227_s8 = inlined_call_operand.hbm [shape: bf16[128,128], index: 8, kind: input, shape index: {}]   ;;  %s2228_s9 = inlined_call_operand.vmem [shape: f32[1,128], index: 9, kind: input, shape index: {}]   ;;  %s2229_s10 = inlined_call_operand.hbm [shape: f32[2,8,128], index: 10, kind: output, shape index: {0}]   ;;  %s2230_s11 = inlined_call_operand.hbm [shape: f32[2,8,128], index: 11, kind: output, shape index: {1}]  }
   0x1   :  { %2244 = sst [smem:[#allocation27_spill]] %s2220_s1 }
   0x2   :  { %2245 = sst [smem:[#allocation28_spill]] %s2225_s6 }
   0x3   :  { %2246 = sst [smem:[#allocation29_spill]] %s2228_s9 }
   0x4   :  { %2247 = sst [smem:[#allocation30_spill]] %s2229_s10 }
   0x5   :  { %2248 = sst [smem:[#allocation31_spill]] %s2230_s11 }
   0x6   :  { %17 = vsyncpa [#allocation3], 0 }
   0x7   :  { %19 = vsyncpa [#allocation3 + $0x1], 0 }
   0x8   :  { %20 = vsyncpa [#allocation6], 0 }
   0x9   :  { %21 = vsyncpa [#allocation10], 0 }
   0xa   :  { %22 = vsyncpa [#allocation4], 0 }
   0xb   :  { %24 = vsyncpa [#allocation4 + $0x1], 0 }
   0xc   :  { %25 = vsyncpa [#allocation14], 0 }
   0xd   :  { %27 = vsyncpa [#allocation14 + $0x1], 0  ;;  %s1891_s17 = smov 0   ;;  %s1893_s18 = smov 0  }
   0xe   :  { %s1895_s19 = smov 0   ;;  %s1897_s20 = smov 0  }
   0xf   :  { %s1899_s21 = smov 0   ;;  %s1901_s22 = smov 0  }
  0x10 LB: > { %2249 = sst [smem:[#allocation22_spill]] %s1797_s17  ;;  %s1922_s23 = sadd.s32 4294967295, %s1817_s22   ;;  %s1817_s22 = sphi %s1901_s22, %s33_s22   ;;  %s1813_s21 = sphi %s1899_s21, %s2285_s21   ;;  %s1809_s20 = sphi %s1897_s20, %s2284_s20   ;;  %s1805_s19 = sphi %s1895_s19, %s2280_s19   ;;  %s1801_s18 = sphi %s1893_s18, %s2283_s18   ;;  %s1797_s17 = sphi %s1891_s17, %s2282_s17  }
  0x11   : > { %2250 = sst [smem:[#allocation23_spill]] %s1805_s19  ;;  %p1214_p0 = scmp.ge.s32.totalorder %s1817_s22, 1 }
  0x12   : > { %2251 = sst [smem:[#allocation24_spill]] %s1817_s22  ;;  %p2231_p1 = scmp.eq.s32.totalorder %s1922_s23, 0 }
  0x13   : > { %p338_p2 = scmp.lt.s32.totalorder %s1817_s22, 3  ;;  %s1819_s25 = smov [#allocation5]  }
  0x14   : > { %s353_s26 = sshll.u32 %s1819_s25, 4  ;;  %s1820_s28 = smov [#allocation9]   ;;  %s354_s26 = int_to_ptr.vmem [resolvable:$true] %s353_s26 }
  0x15   : > { %p1927_p3 = pnand %p1214_p0, %p338_p2  ;;  %s379_s29 = sshll.u32 %s1820_s28, 4  ;;  %s380_s29 = int_to_ptr.vmem [resolvable:$true] %s379_s29 }
  0x16   : > { %s1542_s30 = scalar_lea.vmem %s354_s26, 64  ;;  %p1550_p11 = scmp.lt.s32.totalorder %s354_s26, %s354_s26 }
  0x17   : > { %s2252_s24 = scalar_select %p1927_p3, 1, 0 }
  0x18   : > { %p1406_p5 = pneg %p1927_p3  ;;  %p1543_p8 = scmp.ne.s32.totalorder %s354_s26, %s1542_s30 }
  0x19   : > { %p1551_p12 = scmp.lt.s32.totalorder %s1542_s30, %s1542_s30 }
  0x1a   : > { %p1936_p6 = pnand %p1406_p5, %p2231_p1 }
  0x1b   : > { %p1552_p13 = por %p1551_p12, %p1550_p11 }
  0x1c   : > { %p1533_p7 = pneg %p1936_p6 }
  0x1e   : > { %p1545_p9 = pnand %p1543_p8, %p1533_p7 }
  0x20   : > { %p1546_p10 = pneg %p1545_p9 }
  0x22   : > { %p1553_p0 = pnand %p1552_p13, %p1546_p10 }
  0x24   : > { %1556 = shalt.err (!%p1553_p0)
}
  0x25   : > { %s2254_s1 = sld [smem:[#allocation27_spill]]  ;;  %s1568_s14 = scalar_lea.vmem %s380_s29, 1024 }
  0x26   : > { %p1569_p2 = scmp.ne.s32.totalorder %s380_s29, %s1568_s14  ;;  %p1576_p8 = scmp.lt.s32.totalorder %s380_s29, %s380_s29 }
  0x27   : > { %p1577_p9 = scmp.lt.s32.totalorder %s1568_s14, %s1568_s14 }
  0x28   : > { %p1571_p5 = pnand %p1569_p2, %p1533_p7 }
  0x29   : > { %p1578_p1 = por %p1577_p9, %p1576_p8 }
  0x2a   : > { %p1572_p4 = pneg %p1571_p5 }
  0x2b   : > { %1409 = dma.hbm_to_vmem [thread:$0]  (!%p1936_p6), %s2254_s1, 64, %s354_s26, [#allocation6]  }
  0x2c   : > { %p1579_p3 = pnand %p1578_p1, %p1572_p4 }
  0x2e   : > { %1582 = shalt.err (!%p1579_p3)
}
  0x2f   : > { %s2233_s15 = smov 64   ;;  %s2235_s16 = smov 4  }
  0x30   : > { %s2255_s6 = sld [smem:[#allocation28_spill]]  ;;  %s1213_s28 = sadd.s32 4294967294, %s1817_s22  }
  0x31   : > { %s45_s30 = sadd.s32 1, %s1813_s21  ;;  %s54_s12 = sadd.s32 1, %s1805_s19 }
  0x32   : > { %p47_p1 = scmp.ge.s32.totalorder %s45_s30, 2  ;;  %p61_p3 = scmp.ne.s32.totalorder %s1805_s19, %s1801_s18 }
  0x33   : > { %p62_p4 = scmp.eq.s32.totalorder %s1817_s22, 0  ;;  %p67_p11 = scmp.ne.s32.totalorder %s1801_s18, %s1797_s17 }
  0x34   : > { %s2287_s30 = smov (%p47_p1, %s45_s30), 0  ;;  %p297_p12 = scmp.eq.s32.totalorder %s1922_s23, 1 }
  0x35   : > { %2256 = sst [smem:[#allocation25_spill]] %s2287_s30  ;;  %p1969_p10 = por %p62_p4, %p61_p3 }
  0x36   : > { %1415 = dma.hbm_to_vmem [thread:$0]  (!%p1936_p6), %s2255_s6, 1024, %s380_s29, [#allocation10], %s2233_s15, %s2233_s15, %s2235_s16  }
  0x37   : > { %s49_s29 = ssub.s32 %s1813_s21, %s2287_s30  ;;  %p2258_p0 = scmp.eq.s32.totalorder %s1922_s23, 0 }
  0x38   : > { %p52_p13 = scmp.eq.s32.totalorder %s49_s29, 0  ;;  %p1984_p5 = por %p297_p12, %p61_p3 }
  0x39   : > { %p1980_p2 = por %p2258_p0, %p67_p11  ;;  %p303_p8 = scmp.eq.s32.totalorder %s1213_s28, 1 }
  0x3a   : > { %s1989_s26 = scalar_select %p52_p13, %s1805_s19, %s54_s12  }
  0x3b   : > { %p1991_p9 = por %p303_p8, %p67_p11  ;;  %p1437_p1 = scmp.lt.s32.totalorder %s1817_s22, 2 }
  0x3c   : > { %2261 = sst [smem:[#allocation26_spill]] %s1989_s26  ;;  %s412_s16 = sand.u32 1, %s1817_s22  }
  0x3d   : > { %s414_s29 = sand.u32 1, %s1805_s19   ;;  %s1221_s6 = sshll.u32 %s1813_s21, 6 }
  0x3e   : > { %s1220_s1 = sshll.u32 %s414_s29, 2  ;;  %s422_s11 = scalar_lea.hbm %s2219_s0, %s1221_s6 }
  0x3f   : > { %s416_s9 = scalar_lea.vmem [#allocation2], %s1220_s1  ;;  %p2004_p3 = pnand %p1437_p1, %p1969_p10 }
  0x40   : > { %s424_s10 = sshll.u32 %s416_s9, 4  ;;  %s1222_s12 = sshll.u32 %s414_s29, 5  ;;  %s425_s10 = int_to_ptr.vmem [resolvable:$true] %s424_s10 }
  0x41   : > { %s1277_s26 = sshll.u32 %s1813_s21, 9  ;;  %s2009_s22 = scalar_lea.sflag [#allocation3], %s412_s16 }
  0x42   : > { %p1585_p4 = pneg %p2004_p3  ;;  %s1596_s19 = scalar_lea.vmem %s425_s10, 64 }
  0x43   : > { %p1597_p11 = scmp.ne.s32.totalorder %s425_s10, %s1596_s19  ;;  %s1823_s1 = smov [#allocation2]  }
  0x44   : > { %s1601_s6 = sshll.u32 %s1823_s1, 4  ;;  %s1602_s6 = int_to_ptr.vmem [resolvable:$false] %s1601_s6 }
  0x45   : > { %p1599_p12 = pnand %p1597_p11, %p1585_p4  ;;  %s1603_s9 = scalar_lea.vmem %s1602_s6, 128 }
  0x46   : > { %p1604_p10 = scmp.lt.s32.totalorder %s425_s10, %s1602_s6  ;;  %p1605_p0 = scmp.lt.s32.totalorder %s1603_s9, %s1596_s19 }
  0x47   : > { %p1600_p13 = pneg %p1599_p12 }
  0x48   : > { %p1606_p8 = por %p1605_p0, %p1604_p10 }
  0x4a   : > { %p1607_p1 = pnand %p1606_p8, %p1600_p13 }
  0x4c   : > { %1610 = shalt.err (!%p1607_p1)
}
  0x4d   : > { %1422 = dma.hbm_to_vmem [thread:$0]  (!%p2004_p3), %s422_s11, 64, %s425_s10, %s2009_s22  }
  0x4e   : > { %s435_s17 = scalar_lea.vmem [#allocation7], %s1222_s12  ;;  %s1824_s30 = smov [#allocation8]  }
  0x4f   : > { %s442_s16 = sshll.u32 %s435_s17, 4  ;;  %s363_s13 = sshll.u32 %s1824_s30, 4  ;;  %s2019_s16 = int_to_ptr.vmem [resolvable:$true] %s442_s16  ;;  %s364_s13 = int_to_ptr.vmem [resolvable:$true] %s363_s13 }
  0x50   : > { %s1622_s29 = scalar_lea.vmem %s364_s13, 1024  ;;  %p1630_p13 = scmp.lt.s32.totalorder %s364_s13, %s364_s13 }
  0x51   : > { %p1623_p11 = scmp.ne.s32.totalorder %s364_s13, %s1622_s29  ;;  %p1631_p0 = scmp.lt.s32.totalorder %s1622_s29, %s1622_s29 }
  0x53   : > { %p1625_p12 = pnand %p1623_p11, %p1533_p7  ;;  %p1632_p8 = por %p1631_p0, %p1630_p13 }
  0x55   : > { %p1626_p10 = pneg %p1625_p12 }
  0x57   : > { %p1633_p1 = pnand %p1632_p8, %p1626_p10 }
  0x59   : > { %1636 = shalt.err (!%p1633_p1)
}
  0x5a   : > { %s2264_s10 = smov 4   ;;  %s2265_s11 = smov 64  }
  0x5b   : > { %1412 = dma.hbm_to_vmem [thread:$0]  (!%p1936_p6), %s2223_s4, 1024, %s364_s13, [#allocation6], %s2265_s11, %s2265_s11, %s2264_s10  }
  0x5c   : > { %s1825_s1 = smov [#allocation11]   ;;  %s2037_s30 = scalar_lea.hbm %s2221_s2, %s1277_s26 }
  0x5d   : > { %s395_s6 = sshll.u32 %s1825_s1, 4  ;;  %s396_s6 = int_to_ptr.vmem [resolvable:$true] %s395_s6 }
  0x5e   : > { %s1648_s29 = scalar_lea.vmem %s396_s6, 1024  ;;  %p1656_p13 = scmp.lt.s32.totalorder %s396_s6, %s396_s6 }
  0x5f   : > { %p1649_p11 = scmp.ne.s32.totalorder %s396_s6, %s1648_s29  ;;  %p1657_p0 = scmp.lt.s32.totalorder %s1648_s29, %s1648_s29 }
  0x61   : > { %p1651_p12 = pnand %p1649_p11, %p1533_p7  ;;  %p1658_p8 = por %p1657_p0, %p1656_p13 }
  0x63   : > { %p1652_p10 = pneg %p1651_p12 }
  0x65   : > { %p1659_p1 = pnand %p1658_p8, %p1652_p10 }
  0x67   : > { %1662 = shalt.err (!%p1659_p1)
}
  0x68   : > { %1418 = dma.hbm_to_vmem [thread:$0]  (!%p1936_p6), %s2227_s8, 1024, %s396_s6, [#allocation10], %s2265_s11, %s2265_s11, %s2264_s10  }
  0x69   : > { %s1676_s19 = scalar_lea.vmem %s2019_s16, 512  ;;  %s1826_s12 = smov [#allocation7]  }
  0x6a   : > { %p1677_p7 = scmp.ne.s32.totalorder %s2019_s16, %s1676_s19  ;;  %s1681_s1 = sshll.u32 %s1826_s12, 4  ;;  %s1682_s1 = int_to_ptr.vmem [resolvable:$false] %s1681_s1 }
  0x6b   : > { %s1683_s27 = scalar_lea.vmem %s1682_s1, 1024  ;;  %p1684_p10 = scmp.lt.s32.totalorder %s2019_s16, %s1682_s1 }
  0x6c   : > { %p1679_p11 = pnand %p1677_p7, %p1585_p4  ;;  %p1685_p13 = scmp.lt.s32.totalorder %s1683_s27, %s1676_s19 }
  0x6e   : > { %p1680_p12 = pneg %p1679_p11  ;;  %p1686_p0 = por %p1685_p13, %p1684_p10 }
  0x70   : > { %p1687_p8 = pnand %p1686_p0, %p1680_p12 }
  0x72   : > { %1690 = shalt.err (!%p1687_p8)
}
  0x73   : > { %1425 = dma.hbm_to_vmem [thread:$0]  (!%p2004_p3), %s2037_s30, 512, %s2019_s16, %s2009_s22, %s2265_s11, %s2265_s11, %s2264_s10  }
  0x74   : > { %p2266_p6 = scmp.ne.s32.totalorder %s2252_s24, 0 }
  0x75   : > { %s462_s6 = sand.u32 (!%p2266_p6), 1, %s1922_s23   ;;  %s2068_s9 = sand.u32 (!%p2266_p6), 1, %s1801_s18  }
  0x76   : > { %460 = sbr.rel (%p2266_p6) target bundleno = 1005 (0x3ed), region = 60  ;;  %s1226_s17 = sshll.u32 (!%p2266_p6), %s2068_s9, 2 }
  0x77   : > { %s463_s29 = scalar_lea.sflag (!%p2266_p6), [#allocation3], %s462_s6  ;;  %s466_s28 = scalar_lea.vmem (!%p2266_p6), [#allocation2], %s1226_s17 }
  0x7b   : > { %1768 = dma.done.wait (%p1980_p2), %s463_s29, 64  }
  0x7c   : > { %1770 = vsyncadd (%p1980_p2), %s463_s29, 4294967232  ;;  %p2267_p3 = scmp.eq.s32.totalorder %s1922_s23, 0 }
  0x7e   : > { %1772 = dma.done.wait (%p2267_p3), [#allocation6], 64   ;;  %p2268_p4 = pmov %p2267_p3 }
  0x7f   : > { %s1228_s22 = sshll.u32 %s2068_s9, 5 }
  0x80   : > { %1774 = vsyncadd (%p2268_p4), [#allocation6], 4294967232  ;;  %s479_s24 = scalar_lea.vmem [#allocation7], %s1228_s22 }
  0x81   : > { %1776 = dma.done.wait (%p1980_p2), %s463_s29, 512  }
  0x82   : > { %1778 = vsyncadd (%p1980_p2), %s463_s29, 4294966784  ;;  %p2269_p1 = pmov %p2267_p3 }
  0x84   : > { %1780 = dma.done.wait (%p2269_p1), [#allocation6], 1024   ;;  %p2270_p7 = pmov %p2269_p1 }
  0x85   : > { %p2271_p11 = pmov %p2269_p1 }
  0x86   : > { %1782 = vsyncadd (%p2270_p7), [#allocation6], 4294966272 }
  0x87   : > { %1784 = dma.done.wait (%p2271_p11), [#allocation10], 2048   ;;  %p2272_p12 = pmov %p2269_p1 }
  0x88   : > { %v1827_v0 = vmov 0.0   ;;  %vm1828_vm0 = vmmov 0   ;;  %v1499_v1 = vld [vmem:[%s479_s24 + $0x18] sm:$0xff]   ;;  %v1500_v2 = vld [vmem:[%s479_s24 + $0x10] sm:$0xff]   ;;  %v1501_v3 = vld [vmem:[%s479_s24 + $0x8] sm:$0xff]   ;;  %vm587_vm1 = vcmask 523264  }
  0x89   : > { %1786 = vsyncadd (%p2272_p12), [#allocation10], 4294965248  ;;  %1310 = vmatprep.subr.bf16.mxu0 %v1827_v0  ;;  %1318 = vmatprep.mubr.msk.bf16.mxu0 %vm1828_vm0, %v1827_v0  ;;  %v1502_v4 = vld [vmem:[%s479_s24] sm:$0xff]   ;;  %v547_v5 = vld [vmem:[%s466_s28] sm:$0xf]  ;;  %p543_p2 = scmp.lt.s32.totalorder %s1809_s20, 1 }
  0x8a   : > { %1322 = vmatprep.subr.bf16.mxu1 %v1827_v0  ;;  %1338 = vmatprep.mubr.msk.bf16.mxu1 %vm1828_vm0, %v1827_v0  ;;  %v1503_v6 = vld [vmem:[#allocation8 + $0x38] sm:$0xff]   ;;  %v1504_v7 = vld [vmem:[#allocation8 + $0x30] sm:$0xff]   ;;  %v1505_v8 = vld [vmem:[#allocation8 + $0x28] sm:$0xff]   ;;  %s1232_s19 = sshll.u32 %s2068_s9, 3  ;;  %s1273_s1 = sshll.u32 %s1809_s20, 7 }
  0x8b   : > { %1311 = vmatpush3.bf16.msra.mxu0 %v1499_v1  ;;  %1323 = vmatpush3.bf16.msra.mxu1 %v1503_v6  ;;  %v1506_v9 = vld [vmem:[#allocation8 + $0x20] sm:$0xff]   ;;  %v1507_v10 = vld [vmem:[#allocation8 + $0x18] sm:$0xff]   ;;  %v1508_v11 = vld [vmem:[#allocation8 + $0x10] sm:$0xff]   ;;  %s544_s23 = scalar_select %p543_p2, %s1809_s20, 1 }
  0x8c   : > { %1312 = vmatprep.subr.bf16.mxu0 %v1827_v0  ;;  %1324 = vmatprep.subr.bf16.mxu1 %v1827_v0  ;;  %v1509_v12 = vld [vmem:[#allocation8 + $0x8] sm:$0xff]   ;;  %v1510_v13 = vld [vmem:[#allocation8] sm:$0xff]   ;;  %v1511_v14 = vld [vmem:[#allocation9 + $0x38] sm:$0xff]   ;;  %s535_s12 = scalar_lea.vmem [#allocation12], %s1232_s19  ;;  %s2273_s29 = sld [smem:[#allocation30_spill]] }
  0x8d   : > { %v1512_v15 = vld [vmem:[#allocation9 + $0x30] sm:$0xff]   ;;  %v1513_v16 = vld [vmem:[#allocation9 + $0x28] sm:$0xff]   ;;  %v1514_v17 = vld [vmem:[#allocation9 + $0x20] sm:$0xff]   ;;  %s545_s10 = scalar_lea.vmem %s2222_s3, %s544_s23  ;;  %s1016_s27 = sshll.u32 %s535_s12, 4  ;;  %s1017_s27 = int_to_ptr.vmem [resolvable:$true] %s1016_s27 }
  0x8e   : > { %v1515_v18 = vld [vmem:[#allocation9 + $0x18] sm:$0xff]   ;;  %v1516_v19 = vld [vmem:[#allocation9 + $0x10] sm:$0xff]   ;;  %v1517_v49 = vld [vmem:[#allocation9 + $0x8] sm:$0xff]   ;;  %s997_s22 = scalar_lea.sflag [#allocation4], %s2068_s9  ;;  %s1691_s24 = scalar_lea.vmem %s1017_s27, 128 }
  0x8f   : > { %1313 = vmatpush3.bf16.msra.mxu0 %v1500_v2  ;;  %1325 = vmatpush3.bf16.msra.mxu1 %v1504_v7  ;;  %v1234_v20 = vld [vmem:[%s545_s10] ss:$0 sm:$0xff]  ;;  %v651_v37 = vld [vmem:[#allocation5] sm:$0xf]  ;;  %v1518_v50 = vld [vmem:[#allocation9] sm:$0xff]   ;;  %p1692_p10 = scmp.ne.s32.totalorder %s1017_s27, %s1691_s24  ;;  %s1829_s23 = smov [#allocation12]  }
  0x90   : > { %1314 = vmatprep.subr.bf16.mxu0 %v1827_v0  ;;  %1326 = vmatprep.subr.bf16.mxu1 %v1827_v0  ;;  %v652_v40 = vunpack.c.l.bf16 %v651_v37  ;;  %v1519_v51 = vld [vmem:[#allocation11 + $0x38] sm:$0xff]   ;;  %v1520_v52 = vld [vmem:[#allocation11 + $0x30] sm:$0xff]   ;;  %v1521_v53 = vld [vmem:[#allocation11 + $0x28] sm:$0xff]   ;;  %s1695_s14 = sshll.u32 %s1829_s23, 4  ;;  %s1696_s14 = int_to_ptr.vmem [resolvable:$false] %s1695_s14 }
  0x91   : > { %v1522_v54 = vld [vmem:[#allocation11 + $0x20] sm:$0xff]   ;;  %v1523_v55 = vld [vmem:[#allocation11 + $0x18] sm:$0xff]   ;;  %v1524_v56 = vld [vmem:[#allocation11 + $0x10] sm:$0xff]   ;;  %p1693_p13 = pnand %p1692_p10, %p1984_p5  ;;  %s1697_s16 = scalar_lea.vmem %s1696_s14, 256 }
  0x92   : > { %v653_v45 = vmul.f32 0.7, %v652_v40  ;;  %v1244_v57 = vld [vmem:[%s2224_s5] ss:$0 sm:$0xff]  ;;  %v1525_v2 = vld [vmem:[#allocation11 + $0x8] sm:$0xff]   ;;  %s1014_s28 = scalar_lea.hbm %s2273_s29, %s1273_s1  ;;  %p1698_p8 = scmp.lt.s32.totalorder %s1017_s27, %s1696_s14 }
  0x93   : > { %1315 = vmatpush3.bf16.msra.mxu0 %v1501_v3  ;;  %1327 = vmatpush3.bf16.msra.mxu1 %v1505_v8  ;;  %v1526_v3 = vld [vmem:[#allocation11] sm:$0xff]   ;;  %p1694_p0 = pneg %p1693_p13  ;;  %p1699_p6 = scmp.lt.s32.totalorder %s1697_s16, %s1691_s24 }
  0x94   : > { %1316 = vmatprep.subr.bf16.mxu0 %v1827_v0  ;;  %1328 = vmatprep.subr.bf16.mxu1 %v1827_v0 }
  0x95   : > { %p1700_p3 = por %p1699_p6, %p1698_p8 }
  0x97   : > { %1317 = vmatpush3.bf16.msra.mxu0 %v1502_v4  ;;  %1329 = vmatpush3.bf16.msra.mxu1 %v1506_v9  ;;  %v1253_v4 = vld [vmem:[%s2226_s7] ss:$0 sm:$0xff]  ;;  %p1701_p4 = pnand %p1700_p3, %p1694_p0 }
  0x98   : > { %1342 = vmatprep.subr.bf16.mxu0 %v1827_v0  ;;  %1330 = vmatprep.subr.bf16.mxu1 %v1827_v0 }
  0x9a   : > { %1319 = vmatmul.mubr.msk.bf16.vlgmr.msra.gmra.mxu0 %vm587_vm1, %v547_v5 }
  0x9b   : > { %1358 = vmatprep.mubr.msk.bf16.mxu0 %vm1828_vm0, %v1827_v0  ;;  %1331 = vmatpush3.bf16.msra.mxu1 %v1507_v10 }
  0x9c   : > { %1332 = vmatprep.subr.bf16.mxu1 %v1827_v0  ;;  %1343 = vmatpush3.bf16.msra.mxu0 %v1511_v14 }
  0x9d   : > { %1344 = vmatprep.subr.bf16.mxu0 %v1827_v0 }
  0x9f   : > { %1333 = vmatpush3.bf16.msra.mxu1 %v1508_v11 }
  0xa0   : > { %1334 = vmatprep.subr.bf16.mxu1 %v1827_v0  ;;  %1345 = vmatpush3.bf16.msra.mxu0 %v1512_v15 }
  0xa1   : > { %1346 = vmatprep.subr.bf16.mxu0 %v1827_v0 }
  0xa3   : > { %1335 = vmatpush3.bf16.msra.mxu1 %v1509_v12 }
  0xa4   : > { %1336 = vmatprep.subr.bf16.mxu1 %v1827_v0  ;;  %1347 = vmatpush3.bf16.msra.mxu0 %v1513_v16 }
  0xa5   : > { %1348 = vmatprep.subr.bf16.mxu0 %v1827_v0 }
  0xa7   : > { %1337 = vmatpush3.bf16.msra.mxu1 %v1510_v13 }
  0xa8   : > { %1362 = vmatprep.subr.bf16.mxu1 %v1827_v0  ;;  %1349 = vmatpush3.bf16.msra.mxu0 %v1514_v17 }
  0xa9   : > { %1350 = vmatprep.subr.bf16.mxu0 %v1827_v0 }
  0xac   : > { %1351 = vmatpush3.bf16.msra.mxu0 %v1515_v18 }
  0xad   : > { %1352 = vmatprep.subr.bf16.mxu0 %v1827_v0 }
  0xb0   : > { %1353 = vmatpush3.bf16.msra.mxu0 %v1516_v19 }
  0xb1   : > { %1354 = vmatprep.subr.bf16.mxu0 %v1827_v0 }
  0xb4   : > { %1355 = vmatpush3.bf16.msra.mxu0 %v1517_v49 }
  0xb5   : > { %1356 = vmatprep.subr.bf16.mxu0 %v1827_v0 }
  0xb8   : > { %1357 = vmatpush3.bf16.msra.mxu0 %v1518_v50 }
 0x15a   : > { %v625_v21 = vpop.f32.mrf.mxu0 }
 0x15b   : > { %v626_v22 = vadd.f32 %v1234_v20, %v625_v21 }
 0x15c   : > { %v1320_v23 = vpop.f32.mrf.mxu0 }
 0x15d   : > { %v1240_v24 = vadd.f32 -0.1, %v626_v22  ;;  %v632_v31 = vsub.f32 0.0, %v626_v22 }
 0x15e   : > { %v628_v25 = vpop.f32.mrf.mxu0 }
 0x15f   : > { %v634_v26 = vsub.f32 0.0, %v1240_v24  ;;  %v1241_v33 = vadd.f32 -0.1, %v632_v31  ;;  %vm637_vm3 = vcmp.gt.f32.partialorder %v1240_v24, 0.0 }
 0x160   : > { %v1321_v27 = vpop.f32.mrf.mxu0 }
 0x161   : > { %v635_v28 = vmul.f32 1.442695, %v634_v26  ;;  %vm644_vm2 = vcmp.gt.f32.partialorder %v1241_v33, 0.0 }
 0x163   : > { %1527 = vpow2.f32 %v635_v28 }
 0x170   : > { %v1528_v29 = vpop.eup %1527 }
 0x171   : > { %1529 = vrcp.f32 %v1528_v29  ;;  %v645_v30 = vmul.f32 0.8187308, %v1528_v29 }
 0x173   : > { %v1243_v32 = vadd.f32 -1.0, %v645_v30 }
 0x175   : > { %v647_v34 = vmul.f32 1.6732632, %v1243_v32 }
 0x177   : > { %v648_v39 = vsel %vm644_vm2, %v1241_v33, %v647_v34 }
 0x178   : > { %v649_v43 = vmul.f32 1.050701, %v648_v39 }
 0x17e   : > { %v1530_v35 = vpop.eup %1529 }
 0x17f   : > { %v1242_v36 = vadd.f32 -1.0, %v1530_v35 }
 0x181   : > { %v641_v38 = vmul.f32 1.6732632, %v1242_v36 }
 0x183   : > { %v642_v41 = vsel %vm637_vm3, %v1240_v24, %v641_v38 }
 0x184   : > { %v643_v42 = vmul.f32 1.050701, %v642_v41 }
 0x186   : > { %v650_v44 = vsub.f32 %v643_v42, %v649_v43 }
 0x188   : > { %v654_v46 = vmul.f32 0.3, %v650_v44 }
 0x18a   : > { %v655_v47 = vadd.f32 %v654_v46, %v653_v45 }
 0x18c   : > { %v656_v48 = vpack.c.bf16 %v655_v47, %v655_v47 }
 0x18e   : > { %1339 = vmatmul.mubr.bf16.vlgmr.msra.gmra.mxu1 %v656_v48 }
 0x18f   : > { %1378 = vmatprep.mubr.msk.bf16.mxu1 %vm1828_vm0, %v1827_v0  ;;  %1363 = vmatpush3.bf16.msra.mxu1 %v1519_v51 }
 0x190   : > { %1364 = vmatprep.subr.bf16.mxu1 %v1827_v0 }
 0x193   : > { %1365 = vmatpush3.bf16.msra.mxu1 %v1520_v52 }
 0x194   : > { %1366 = vmatprep.subr.bf16.mxu1 %v1827_v0 }
 0x197   : > { %1367 = vmatpush3.bf16.msra.mxu1 %v1521_v53 }
 0x198   : > { %1368 = vmatprep.subr.bf16.mxu1 %v1827_v0 }
 0x19b   : > { %1369 = vmatpush3.bf16.msra.mxu1 %v1522_v54 }
 0x19c   : > { %1370 = vmatprep.subr.bf16.mxu1 %v1827_v0 }
 0x19f   : > { %1371 = vmatpush3.bf16.msra.mxu1 %v1523_v55 }
 0x1a0   : > { %1372 = vmatprep.subr.bf16.mxu1 %v1827_v0 }
 0x1a3   : > { %1373 = vmatpush3.bf16.msra.mxu1 %v1524_v56 }
 0x1a4   : > { %1374 = vmatprep.subr.bf16.mxu1 %v1827_v0 }
 0x1a7   : > { %1375 = vmatpush3.bf16.msra.mxu1 %v1525_v2 }
 0x1a8   : > { %1376 = vmatprep.subr.bf16.mxu1 %v1827_v0 }
 0x1ab   : > { %1377 = vmatpush3.bf16.msra.mxu1 %v1526_v3 }
 0x24e   : > { %v762_v58 = vpop.f32.mrf.mxu1 }
 0x24f   : > { %v763_v59 = vadd.f32 %v1244_v57, %v762_v58 }
 0x250   : > { %v1340_v60 = vpop.f32.mrf.mxu1 }
 0x251   : > { %v768_v61 = vmax.f32 %v763_v59, 0.0 }
 0x252   : > { %v765_v62 = vpop.f32.mrf.mxu1 }
 0x253   : > { %v769_v63 = vpack.c.bf16 %v768_v61, %v768_v61 }
 0x254   : > { %v1341_v1 = vpop.f32.mrf.mxu1 }
 0x255   : > { %1359 = vmatmul.mubr.bf16.vlgmr.msra.gmra.mxu0 %v769_v63 }
 0x315   : > { %v875_v5 = vpop.f32.mrf.mxu0 }
 0x316   : > { %v876_v6 = vadd.f32 %v1253_v4, %v875_v5 }
 0x317   : > { %v1360_v7 = vpop.f32.mrf.mxu0 }
 0x318   : > { %v881_v8 = vmax.f32 %v876_v6, 0.0 }
 0x319   : > { %v878_v9 = vpop.f32.mrf.mxu0 }
 0x31a   : > { %882 = vst [vmem:[%s535_s12] sm:$0xff] %v881_v8  ;;  %v883_v10 = vpack.c.bf16 %v881_v8, %v881_v8 }
 0x31b   : > { %v1361_v0 = vpop.f32.mrf.mxu0 }
 0x31c   : > { %1379 = vmatmul.mubr.bf16.vlgmr.msra.gmra.mxu1 %v883_v10 }
 0x31d   : > { %1704 = shalt.err (!%p1701_p4)
}
 0x31e   : > { %s1705_s10 = scalar_lea.hbm %s1014_s28, 128  ;;  %s1709_s13 = scalar_lea.hbm %s2273_s29, 256 }
 0x31f   : > { %p1706_p1 = scmp.ne.s32.totalorder %s1014_s28, %s1705_s10  ;;  %p1710_p12 = scmp.lt.s32.totalorder %s1014_s28, %s2273_s29 }
 0x320   : > { %p1711_p2 = scmp.lt.s32.totalorder %s1709_s13, %s1705_s10 }
 0x321   : > { %p1707_p7 = pnand %p1706_p1, %p1984_p5 }
 0x322   : > { %p1712_p10 = por %p1711_p2, %p1710_p12 }
 0x323   : > { %p1708_p11 = pneg %p1707_p7 }
 0x325   : > { %p1713_p13 = pnand %p1712_p10, %p1708_p11 }
 0x327   : > { %1716 = shalt.err (!%p1713_p13)
}
 0x328   : > { %1402 = dma.vmem_to_hbm [thread:$0]  (%p1984_p5), %s1017_s27, 128, %s1014_s28, %s997_s22  }
 0x329   : > { %s2274_s24 = sld [smem:[#allocation29_spill]]  ;;  %s542_s23 = scalar_lea.vmem [#allocation13], %s1232_s19 }
 0x32a   : > { %s1030_s14 = sshll.u32 %s542_s23, 4  ;;  %s2275_s11 = sld [smem:[#allocation31_spill]]  ;;  %s2173_s14 = int_to_ptr.vmem [resolvable:$true] %s1030_s14 }
 0x32b   : > { %s1002_s27 = scalar_lea.sflag [#allocation14], %s2068_s9  ;;  %s1717_s28 = scalar_lea.vmem %s2173_s14, 128 }
 0x32c   : > { %p1718_p0 = scmp.ne.s32.totalorder %s2173_s14, %s1717_s28  ;;  %s1830_s20 = smov [#allocation13]  }
 0x32d   : > { %s1721_s19 = sshll.u32 %s1830_s20, 4  ;;  %s1722_s19 = int_to_ptr.vmem [resolvable:$false] %s1721_s19 }
 0x32e   : > { %p1719_p8 = pnand %p1718_p0, %p1984_p5  ;;  %s1723_s22 = scalar_lea.vmem %s1722_s19, 256 }
 0x32f   : > { %v1262_v11 = vld [vmem:[%s2274_s24] ss:$0 sm:$0xff]  ;;  %p1724_p3 = scmp.lt.s32.totalorder %s2173_s14, %s1722_s19  ;;  %p1725_p4 = scmp.lt.s32.totalorder %s1723_s22, %s1717_s28 }
 0x330   : > { %s2171_s30 = scalar_lea.hbm %s2275_s11, %s1273_s1  ;;  %p1720_p6 = pneg %p1719_p8 }
 0x331   : > { %p1726_p1 = por %p1725_p4, %p1724_p3 }
 0x333   : > { %p1727_p7 = pnand %p1726_p1, %p1720_p6 }
 0x3dc   : > { %v989_v12 = vpop.f32.mrf.mxu1 }
 0x3dd   : > { %v990_v13 = vadd.f32 %v1262_v11, %v989_v12 }
 0x3de   : > { %v1380_v14 = vpop.f32.mrf.mxu1 }
 0x3df   : > { %995 = vst [vmem:[%s542_s23] sm:$0xff] %v990_v13 }
 0x3e0   : > { %v992_v15 = vpop.f32.mrf.mxu1 }
 0x3e1   : > { %1730 = shalt.err (!%p1727_p7)
}
 0x3e2   : > { %s1731_s1 = scalar_lea.hbm %s2171_s30, 128  ;;  %s1735_s26 = scalar_lea.hbm %s2275_s11, 256 }
 0x3e3   : > { %p1732_p11 = scmp.ne.s32.totalorder %s2171_s30, %s1731_s1  ;;  %p1736_p10 = scmp.lt.s32.totalorder %s2171_s30, %s2275_s11 }
 0x3e4   : > { %p1737_p13 = scmp.lt.s32.totalorder %s1735_s26, %s1731_s1 }
 0x3e5   : > { %p1733_p12 = pnand %p1732_p11, %p1984_p5 }
 0x3e6   : > { %p1738_p0 = por %p1737_p13, %p1736_p10 }
 0x3e7   : > { %p1734_p2 = pneg %p1733_p12 }
 0x3e9   : > { %p1739_p8 = pnand %p1738_p0, %p1734_p2 }
 0x3eb   : > { %1742 = shalt.err (!%p1739_p8)
}
 0x3ec   : > { %1403 = dma.vmem_to_hbm [thread:$0]  (%p1984_p5), %s2173_s14, 128, %s2171_s30, %s1002_s27   ;;  %v1381_v16 = vpop.f32.mrf.mxu1 }
 0x3ed PF: > { %s2276_s17 = sld [smem:[#allocation22_spill]] }
 0x3ee   : > { %s2277_s24 = sld [smem:[#allocation24_spill]] }
 0x3f3   : > { %s1042_s23 = sand.u32 1, %s2276_s17  }
 0x3f4   : > { %p2278_p6 = scmp.ge.s32.totalorder %s2277_s24, 2  ;;  %s1043_s16 = scalar_lea.sflag [#allocation4], %s1042_s23 }
 0x3f6   : > { %p1427_p3 = pnand %p2278_p6, %p1991_p9 }
 0x3f8   : > { %p1428_p4 = pneg %p1427_p3 }
 0x3fa   : > { %1788 = dma.done.wait (%p1428_p4), %s1043_s16, 128  }
 0x3fb   : > { %1790 = vsyncadd (%p1428_p4), %s1043_s16, 4294967168  ;;  %s1052_s10 = scalar_lea.sflag [#allocation14], %s1042_s23 }
 0x3fc   : > { %1792 = dma.done.wait (%p1428_p4), %s1052_s10, 128  }
 0x3fd   : > { %1794 = vsyncadd (%p1428_p4), %s1052_s10, 4294967168  ;;  %s33_s22 = sadd.s32 1, %s2277_s24   ;;  %s2279_s25 = sld [smem:[#allocation23_spill]] }
 0x3fe   : > { %p30_p1 = scmp.ge.s32.totalorder %s33_s22, 4   ;;  %s2280_s19 = sld [smem:[#allocation26_spill]] }
 0x3ff   : > { %s2281_s14 = sld [smem:[#allocation25_spill]]  ;;  %s2282_s17 = smov %s1801_s18 }
 0x400   : > { %s2284_s20 = smov %s1813_s21 }
 0x401   :  { %32 = sbr.rel (!%p30_p1) target bundleno = 16 (0x10), region = 153 }
 0x403   : > { %s2283_s18 = smov %s2279_s25 }
 0x405   : > { %s2285_s21 = smov %s2281_s14 }
 0x406   :  { %1057 = vsyncpa [#allocation3], 1 }
 0x407   :  { %1059 = vsyncpa [#allocation3 + $0x1], 1 }
 0x408   :  { %1060 = vsyncpa [#allocation6], 1 }
 0x409   :  { %1061 = vsyncpa [#allocation10], 1 }
 0x40a   :  { %1062 = vsyncpa [#allocation4], 1 }
 0x40b   :  { %1064 = vsyncpa [#allocation4 + $0x1], 1 }
 0x40c   :  { %1065 = vsyncpa [#allocation14], 1 }
 0x40d   :  { %1067 = vsyncpa [#allocation14 + $0x1], 1 }

</bundles_post_ra>
